<compile_context>
chip_gen: v6e
topology: v6e:2x2x1
jax: 0.10.0
libtpu: 0.0.40
codegen_flags: <defaults>
</compile_context>

<pallas_src>
import functools

import jax
import jax.numpy as jnp
from jax.experimental import pallas as pl
from jax.experimental.pallas import tpu as pltpu


def calculate_laplacian_with_self_loop(adj):
    """D^{-1/2} (A + I) D^{-1/2} (same as the torch helper).

    The deg > 0 guard differs from torch only for fully isolated rows, which
    cannot occur after adding the self loop (deg >= 1 always).
    """
    a = adj + jnp.eye(adj.shape[0], dtype=adj.dtype)
    deg = a.sum(axis=1)
    d_inv_sqrt = jnp.where(deg > 0, 1.0 / jnp.sqrt(deg), 0.0)
    return a * d_inv_sqrt[:, None] * d_inv_sqrt[None, :]


def _tgcn_gconv_kernel(ax_ref, ah_ref, b_ref, x_ref, h_ref, o_ref):
    # ax_ref: (N*F, N*O) bf16  kron(L^T, Wx), resident
    # ah_ref: (N*G, N*O) bf16  kron(L^T, Wh), resident
    # b_ref : (1, N*O)   f32   bias tiled over nodes, resident
    # x_ref : (bt, N*F)  f32   flattened inputs for bt batches
    # h_ref : (bt, N*G)  f32   flattened hidden state for bt batches
    # o_ref : (bt, N*O)  f32   lane-dense output rows (N*O % 128 == 0 -> unmasked vst)
    #
    # Cast activations to bf16 in-kernel (feedback: f32 on HBM, VPU cast hides
    # under DMA/MXU and halves activation HBM traffic vs a wrapper astype).
    x = x_ref[...].astype(jnp.bfloat16)
    h = h_ref[...].astype(jnp.bfloat16)
    # Two MXU matmuls with 512-deep contraction, f32 accumulation.
    acc = jnp.dot(x, ax_ref[...], preferred_element_type=jnp.float32)
    acc = acc + jnp.dot(h, ah_ref[...], preferred_element_type=jnp.float32)
    # One bias add, one lane-dense store for the whole batch tile.
    o_ref[...] = acc + b_ref[...]


def _pick_batch_tile(batch_size, target_rows=512):
    """Batch rows per grid step.

    Collapse to a single step when the whole batch fits the target (per-step
    overhead ~0.35us dominates at small sizes); otherwise use an 8-aligned tile
    so the (bt, N*O) output block satisfies the (8, 128) sublane rule.
    v7x note: with 2 TensorCores prefer >= 2 grid steps (e.g. pass
    batch_tile = B // 2 rounded to a multiple of 8) once B is large enough.
    """
    if batch_size <= target_rows:
        return batch_size
    return max(8, (target_rows // 8) * 8)


def tgcn_graph_convolution(laplacian, weights, biases, inputs, hidden_state,
                           num_gru_units, output_dim, *, batch_tile=None):
    """Pallas implementation of TGCNGraphConvolution.forward.

    inputs:       (B, N, F) float32
    hidden_state: (B, N * num_gru_units) float32
    laplacian:    (N, N) float32
    weights:      (F + num_gru_units, output_dim) float32
    biases:       (output_dim,) float32
    returns:      (B, N * output_dim) float32
    """
    B, N, F = inputs.shape
    G, O = num_gru_units, output_dim
    assert weights.shape == (F + G, O)
    assert hidden_state.shape == (B, N * G)

    # Fold the (normalized) Laplacian into the weights once, in f32, then cast
    # the resident matrices to bf16 for the MXU.  torch.cat((inputs, hidden), 2)
    # means weight rows [0:F) hit inputs and [F:F+G) hit hidden.
    wx = weights[:F, :]
    wh = weights[F:F + G, :]
    ax = jnp.kron(laplacian.T, wx).astype(jnp.bfloat16)          # (N*F, N*O)
    ah = jnp.kron(laplacian.T, wh).astype(jnp.bfloat16)          # (N*G, N*O)
    bias_row = jnp.tile(biases.astype(jnp.float32), N).reshape(1, N * O)

    # Activations stay f32 (cast to bf16 happens inside the kernel).
    x_flat = inputs.reshape(B, N * F).astype(jnp.float32)        # contiguous, free
    h_flat = hidden_state.astype(jnp.float32)                    # already (B, N*G)

    if batch_tile is None:
        batch_tile = _pick_batch_tile(B)
    padded_B = -(-B // batch_tile) * batch_tile
    if padded_B != B:
        # Zero-padded batches produce (ignored) bias-only rows; sliced off below.
        x_flat = jnp.pad(x_flat, ((0, padded_B - B), (0, 0)))
        h_flat = jnp.pad(h_flat, ((0, padded_B - B), (0, 0)))
    grid = (padded_B // batch_tile,)

    cost = pl.CostEstimate(
        flops=2 * padded_B * (N * F) * (N * O) + 2 * padded_B * (N * G) * (N * O),
        transcendentals=0,
        bytes_accessed=(ax.size + ah.size) * 2
        + (bias_row.size + x_flat.size + h_flat.size + padded_B * N * O) * 4,
    )

    out = pl.pallas_call(
        _tgcn_gconv_kernel,
        out_shape=jax.ShapeDtypeStruct((padded_B, N * O), jnp.float32),
        grid_spec=pltpu.PrefetchScalarGridSpec(
            num_scalar_prefetch=0,
            grid=grid,
            in_specs=[
                pl.BlockSpec((N * F, N * O), lambda b: (0, 0)),      # kron(L^T, Wx), resident
                pl.BlockSpec((N * G, N * O), lambda b: (0, 0)),      # kron(L^T, Wh), resident
                pl.BlockSpec((1, N * O), lambda b: (0, 0)),          # bias row, resident
                pl.BlockSpec((batch_tile, N * F), lambda b: (b, 0)),  # inputs (f32)
                pl.BlockSpec((batch_tile, N * G), lambda b: (b, 0)),  # hidden (f32)
            ],
            out_specs=pl.BlockSpec((batch_tile, N * O), lambda b: (b, 0)),
        ),
        compiler_params=pltpu.CompilerParams(dimension_semantics=("parallel",)),
        cost_estimate=cost,
    )(ax, ah, bias_row, x_flat, h_flat)

    if padded_B != B:
        out = out[:B]
    return out  # already (B, N*O), matching the torch module's final reshape


if __name__ == "__main__":
    batch_size = 2
    num_nodes = 16
    feature_size = 32          # fixed in the module (self.feature_size = 32)
    num_gru_units = 32
    output_dim = 16
    bias_init_value = 0.0

    key = jax.random.PRNGKey(0)
    k_adj, k_w, k_in, k_hid = jax.random.split(key, 4)

    # Deterministic synthetic symmetric adjacency (no explicit self loop).
    adj_raw = jax.random.uniform(k_adj, (num_nodes, num_nodes), dtype=jnp.float32)
    adj = ((adj_raw + adj_raw.T) > 1.0).astype(jnp.float32)
    adj = adj * (1.0 - jnp.eye(num_nodes, dtype=jnp.float32))
    laplacian = calculate_laplacian_with_self_loop(adj)

    # Parameters: Xavier-uniform weights, constant bias (matches reset_parameters).
    fan_in = num_gru_units + feature_size
    fan_out = output_dim
    limit = (6.0 / (fan_in + fan_out)) ** 0.5
    weights = jax.random.uniform(k_w, (fan_in, fan_out), minval=-limit, maxval=limit,
                                 dtype=jnp.float32)
    biases = jnp.full((output_dim,), bias_init_value, dtype=jnp.float32)

    inputs = jax.random.normal(k_in, (batch_size, num_nodes, feature_size),
                               dtype=jnp.float32)
    hidden_state = jax.random.normal(
        k_hid, (batch_size, num_nodes * num_gru_units), dtype=jnp.float32)

    out = tgcn_graph_convolution(laplacian, weights, biases, inputs, hidden_state,
                                 num_gru_units, output_dim)
    out = jax.block_until_ready(out)
    assert out.shape == (batch_size, num_nodes * output_dim)

    # Reference 1: exact f32 math of the torch forward (loose tolerance: the
    # kernel runs its MXU dots on bf16 operands with f32 accumulation).
    concat = jnp.concatenate(
        [inputs, hidden_state.reshape(batch_size, num_nodes, num_gru_units)], axis=2)
    ref_f32 = jnp.einsum('nm,bmk,ko->bno', laplacian, concat, weights) + biases
    ref_f32 = ref_f32.reshape(batch_size, num_nodes * output_dim)
    assert jnp.allclose(out, ref_f32, atol=6e-2, rtol=6e-2), \
        float(jnp.max(jnp.abs(out - ref_f32)))

    # Reference 2: same folded bf16/f32 mixed precision as the kernel (tight tolerance).
    ax_ref = jnp.kron(laplacian.T, weights[:feature_size, :]).astype(jnp.bfloat16)
    ah_ref = jnp.kron(laplacian.T, weights[feature_size:, :]).astype(jnp.bfloat16)
    xb = inputs.reshape(batch_size, num_nodes * feature_size).astype(jnp.bfloat16)
    hb = hidden_state.astype(jnp.bfloat16)
    ref_bf = (jnp.dot(xb, ax_ref, preferred_element_type=jnp.float32)
              + jnp.dot(hb, ah_ref, preferred_element_type=jnp.float32)
              + jnp.tile(biases, num_nodes)[None, :])
    assert jnp.allclose(out, ref_bf, atol=2e-3, rtol=2e-3), \
        float(jnp.max(jnp.abs(out - ref_bf)))

    print("KERNEL_OK")
</pallas_src>

<mosaic_0001>
module attributes {stable_mosaic.version = 11 : i64} {
  func.func @_tgcn_gconv_kernel(%arg0: i32, %arg1: memref<512x256xbf16, #tpu.memory_space<vmem>>, %arg2: memref<512x256xbf16, #tpu.memory_space<vmem>>, %arg3: memref<1x256xf32, #tpu.memory_space<vmem>>, %arg4: memref<2x512xf32, #tpu.memory_space<vmem>>, %arg5: memref<2x512xf32, #tpu.memory_space<vmem>>, %arg6: memref<2x256xf32, #tpu.memory_space<vmem>>) attributes {dimension_semantics = [#tpu.dimension_semantics<parallel>], iteration_bounds = array<i64: 1>, scalar_prefetch = 0 : i64, scratch_operands = 0 : i64, tpu.core_type = #tpu.core_type<tc>, window_params = [{pipeline_mode = #tpu.pipeline_mode<synchronous>, transform_indices = @transform_0, window_bounds = array<i64: 512, 256>}, {pipeline_mode = #tpu.pipeline_mode<synchronous>, transform_indices = @transform_1, window_bounds = array<i64: 512, 256>}, {pipeline_mode = #tpu.pipeline_mode<synchronous>, transform_indices = @transform_2, window_bounds = array<i64: 1, 256>}, {transform_indices = @transform_3, window_bounds = array<i64: 2, 512>}, {transform_indices = @transform_4, window_bounds = array<i64: 2, 512>}, {transform_indices = @transform_5, window_bounds = array<i64: 2, 256>}]} {
    %c0 = arith.constant 0 : index
    %c0_0 = arith.constant 0 : index
    %0 = vector.load %arg4[%c0, %c0_0] : memref<2x512xf32, #tpu.memory_space<vmem>>, vector<2x512xf32>
    %1 = arith.truncf %0 : vector<2x512xf32> to vector<2x512xbf16>
    %c0_1 = arith.constant 0 : index
    %c0_2 = arith.constant 0 : index
    %2 = vector.load %arg5[%c0_1, %c0_2] : memref<2x512xf32, #tpu.memory_space<vmem>>, vector<2x512xf32>
    %3 = arith.truncf %2 : vector<2x512xf32> to vector<2x512xbf16>
    %c0_3 = arith.constant 0 : index
    %c0_4 = arith.constant 0 : index
    %4 = vector.load %arg1[%c0_3, %c0_4] : memref<512x256xbf16, #tpu.memory_space<vmem>>, vector<512x256xbf16>
    %cst = arith.constant dense<0.000000e+00> : vector<2x256xf32>
    %5 = tpu.matmul %1, %4, %cst {dimension_numbers = #tpu.dot_dimension_numbers<[1], [0], [0], [1], [0, 0, 1, 1], [], []>} : vector<2x512xbf16>, vector<512x256xbf16>, vector<2x256xf32> -> vector<2x256xf32>
    %c0_5 = arith.constant 0 : index
    %c0_6 = arith.constant 0 : index
    %6 = vector.load %arg2[%c0_5, %c0_6] : memref<512x256xbf16, #tpu.memory_space<vmem>>, vector<512x256xbf16>
    %cst_7 = arith.constant dense<0.000000e+00> : vector<2x256xf32>
    %7 = tpu.matmul %3, %6, %cst_7 {dimension_numbers = #tpu.dot_dimension_numbers<[1], [0], [0], [1], [0, 0, 1, 1], [], []>} : vector<2x512xbf16>, vector<512x256xbf16>, vector<2x256xf32> -> vector<2x256xf32>
    %8 = arith.addf %5, %7 : vector<2x256xf32>
    %c0_8 = arith.constant 0 : index
    %c0_9 = arith.constant 0 : index
    %9 = vector.load %arg3[%c0_8, %c0_9] : memref<1x256xf32, #tpu.memory_space<vmem>>, vector<1x256xf32>
    %10 = vector.broadcast %9 : vector<1x256xf32> to vector<2x256xf32>
    %11 = arith.addf %8, %10 : vector<2x256xf32>
    %c0_10 = arith.constant 0 : index
    %c0_11 = arith.constant 0 : index
    %12 = vector.load %arg6[%c0_10, %c0_11] : memref<2x256xf32, #tpu.memory_space<vmem>>, vector<2x256xf32>
    tpu.vector_store %arg6[%c0_10, %c0_11], %11 {strides = array<i32>} : memref<2x256xf32, #tpu.memory_space<vmem>>, vector<2x256xf32>,
    return
  }
  func.func @transform_0(%arg0: i32) -> (i32, i32) {
    %c0_i32 = arith.constant 0 : i32
    %c0_i32_0 = arith.constant 0 : i32
    %c0_i32_1 = arith.constant 0 : i32
    return %c0_i32, %c0_i32_0 : i32, i32
  }
  func.func @transform_1(%arg0: i32) -> (i32, i32) {
    %c0_i32 = arith.constant 0 : i32
    %c0_i32_0 = arith.constant 0 : i32
    %c0_i32_1 = arith.constant 0 : i32
    return %c0_i32, %c0_i32_0 : i32, i32
  }
  func.func @transform_2(%arg0: i32) -> (i32, i32) {
    %c0_i32 = arith.constant 0 : i32
    %c0_i32_0 = arith.constant 0 : i32
    %c0_i32_1 = arith.constant 0 : i32
    return %c0_i32, %c0_i32_0 : i32, i32
  }
  func.func @transform_3(%arg0: i32) -> (i32, i32) {
    %c0_i32 = arith.constant 0 : i32
    %c0_i32_0 = arith.constant 0 : i32
    return %arg0, %c0_i32 : i32, i32
  }
  func.func @transform_4(%arg0: i32) -> (i32, i32) {
    %c0_i32 = arith.constant 0 : i32
    %c0_i32_0 = arith.constant 0 : i32
    return %arg0, %c0_i32 : i32, i32
  }
  func.func @transform_5(%arg0: i32) -> (i32, i32) {
    %c0_i32 = arith.constant 0 : i32
    %c0_i32_0 = arith.constant 0 : i32
    return %arg0, %c0_i32 : i32, i32
  }
}

</mosaic_0001>

<bundles_post_ra>
// kernel: tpu_custom_call.1
= control target key start
LH: loop header
LB: loop body
LE: loop exit
PB: predicated region body
PF: predicated region fallthrough
CT: control target
= control target key end

     0   :  { %10 = vsyncpa [#allocation3], 0  ;;  %s1619_s0 = inlined_call_operand.hbm [shape: bf16[512,256], index: 0, kind: input, shape index: {}]   ;;  %s1620_s1 = inlined_call_operand.hbm [shape: bf16[512,256], index: 1, kind: input, shape index: {}]   ;;  %s1621_s2 = inlined_call_operand.vmem [shape: f32[1,256], index: 2, kind: input, shape index: {}]   ;;  %s1622_s3 = inlined_call_operand.hbm [shape: f32[2,512], index: 3, kind: input, shape index: {}]   ;;  %s1623_s4 = inlined_call_operand.hbm [shape: f32[2,512], index: 4, kind: input, shape index: {}]   ;;  %s1624_s5 = inlined_call_operand.hbm [shape: f32[2,256], index: 5, kind: output, shape index: {}]  }
   0x1   :  { %11 = vsyncpa [#allocation6], 0 }
   0x2   :  { %12 = vsyncpa [#allocation9], 0 }
   0x3   :  { %13 = vsyncpa [#allocation4], 0  ;;  %s1540_s18 = smov [#allocation5]   ;;  %s1541_s20 = smov [#allocation2]  }
   0x4   :  { %s31_s19 = sshll.u32 %s1540_s18, 4  ;;  %s19_s21 = sshll.u32 %s1541_s20, 4  ;;  %s32_s19 = int_to_ptr.vmem [resolvable:$true] %s31_s19  ;;  %s20_s21 = int_to_ptr.vmem [resolvable:$true] %s19_s21 }
   0x5   :  { %s1440_s22 = scalar_lea.vmem %s32_s19, 8192  ;;  %p1445_p1 = scmp.lt.s32.totalorder %s32_s19, %s32_s19 }
   0x6   :  { %p1441_p0 = scmp.ne.s32.totalorder %s32_s19, %s1440_s22  ;;  %p1446_p2 = scmp.lt.s32.totalorder %s1440_s22, %s1440_s22 }
   0x8   :  { %p1447_p3 = por %p1446_p2, %p1445_p1 }
   0xa   :  { %p1448_p4 = pnand %p1447_p3, %p1441_p0 }
   0xc   :  { %1451 = shalt.err (!%p1448_p4)
}
   0xd   :  { %s1542_s23 = smov 128   ;;  %s1543_s24 = smov 8  }
   0xe   :  { %37 = dma.hbm_to_vmem [thread:$0]  %s1620_s1, 8192, %s32_s19, [#allocation6], %s1542_s23, %s1542_s23, %s1543_s24  }
   0xf   :  { %s1460_s27 = scalar_lea.vmem %s20_s21, 8192  ;;  %p1465_p6 = scmp.lt.s32.totalorder %s20_s21, %s20_s21 }
  0x10   :  { %p1461_p5 = scmp.ne.s32.totalorder %s20_s21, %s1460_s27  ;;  %p1466_p7 = scmp.lt.s32.totalorder %s1460_s27, %s1460_s27 }
  0x12   :  { %p1467_p8 = por %p1466_p7, %p1465_p6 }
  0x14   :  { %p1468_p9 = pnand %p1467_p8, %p1461_p5 }
  0x16   :  { %1471 = shalt.err (!%p1468_p9)
}
  0x17   :  { %25 = dma.hbm_to_vmem [thread:$0]  %s1619_s0, 8192, %s20_s21, [#allocation3], %s1542_s23, %s1542_s23, %s1543_s24  }
  0x18   :  { %s1544_s30 = smov [#allocation7]   ;;  %s1545_s7 = smov [#allocation8]  }
  0x19   :  { %s46_s6 = sshll.u32 %s1544_s30, 4  ;;  %s56_s8 = sshll.u32 %s1545_s7, 4  ;;  %s47_s6 = int_to_ptr.vmem [resolvable:$true] %s46_s6  ;;  %s57_s8 = int_to_ptr.vmem [resolvable:$true] %s56_s8 }
  0x1a   :  { %s1480_s9 = scalar_lea.vmem %s47_s6, 128  ;;  %p1485_p11 = scmp.lt.s32.totalorder %s47_s6, %s47_s6 }
  0x1b   :  { %p1481_p10 = scmp.ne.s32.totalorder %s47_s6, %s1480_s9  ;;  %p1486_p12 = scmp.lt.s32.totalorder %s1480_s9, %s1480_s9 }
  0x1d   :  { %p1487_p13 = por %p1486_p12, %p1485_p11 }
  0x1f   :  { %p1488_p0 = pnand %p1487_p13, %p1481_p10 }
  0x21   :  { %1491 = shalt.err (!%p1488_p0)
}
  0x22   :  { %49 = dma.hbm_to_vmem [thread:$0]  %s1622_s3, 128, %s47_s6, [#allocation6]  }
  0x23   :  { %s1500_s11 = scalar_lea.vmem %s57_s8, 128  ;;  %p1505_p2 = scmp.lt.s32.totalorder %s57_s8, %s57_s8 }
  0x24   :  { %p1501_p1 = scmp.ne.s32.totalorder %s57_s8, %s1500_s11  ;;  %p1506_p3 = scmp.lt.s32.totalorder %s1500_s11, %s1500_s11 }
  0x26   :  { %p1507_p4 = por %p1506_p3, %p1505_p2 }
  0x28   :  { %p1508_p5 = pnand %p1507_p4, %p1501_p1 }
  0x2a   :  { %1511 = shalt.err (!%p1508_p5)
}
  0x2b   :  { %59 = dma.hbm_to_vmem [thread:$0]  %s1623_s4, 128, %s57_s8, [#allocation9]  }
  0x2c   :  { %1532 = dma.done.wait [#allocation3], 8192  }
  0x2d   :  { %1533 = vsyncadd [#allocation3], 4294959104 }
  0x2e   :  { %1534 = dma.done.wait [#allocation6], 8320  }
  0x2f   :  { %1535 = vsyncadd [#allocation6], 4294958976 }
  0x30   :  { %1536 = dma.done.wait [#allocation9], 128  }
  0x31   :  { %1537 = vsyncadd [#allocation9], 4294967168  ;;  %v1238_v0 = vld [vmem:[#allocation5 + $0x74] ss:$8 sps:$4 sm:$0xff]   ;;  %v1242_v2 = vld [vmem:[#allocation5 + $0x70] ss:$8 sps:$4 sm:$0xff]   ;;  %v78_v38 = vlaneseq }
  0x32   :  { %v1240_v1 = vld [vmem:[#allocation5 + $0x174] ss:$8 sps:$4 sm:$0xff]   ;;  %574 = vmatprep.subr.bf16.mxu0 %v1238_v0  ;;  %v1243_v3 = vld [vmem:[#allocation5 + $0x170] ss:$8 sps:$4 sm:$0xff]   ;;  %v1244_v4 = vld [vmem:[#allocation5 + $0x64] ss:$8 sps:$4 sm:$0xff]  }
  0x33   :  { %615 = vmatprep.subr.bf16.mxu1 %v1240_v1  ;;  %575 = vmatpush1.bf16.msra.mxu0 %v1242_v2  ;;  %v1246_v5 = vld [vmem:[#allocation5 + $0x164] ss:$8 sps:$4 sm:$0xff]   ;;  %v1248_v6 = vld [vmem:[#allocation5 + $0x60] ss:$8 sps:$4 sm:$0xff]   ;;  %v1250_v8 = vld [vmem:[#allocation5 + $0x54] ss:$8 sps:$4 sm:$0xff]  }
  0x34   :  { %616 = vmatpush1.bf16.msra.mxu1 %v1243_v3  ;;  %576 = vmatprep.subr.bf16.mxu0 %v1244_v4  ;;  %v1249_v7 = vld [vmem:[#allocation5 + $0x160] ss:$8 sps:$4 sm:$0xff]   ;;  %v1252_v9 = vld [vmem:[#allocation5 + $0x154] ss:$8 sps:$4 sm:$0xff]   ;;  %v1254_v10 = vld [vmem:[#allocation5 + $0x50] ss:$8 sps:$4 sm:$0xff]  }
  0x35   :  { %617 = vmatprep.subr.bf16.mxu1 %v1246_v5  ;;  %v1255_v11 = vld [vmem:[#allocation5 + $0x150] ss:$8 sps:$4 sm:$0xff]   ;;  %v1256_v12 = vld [vmem:[#allocation5 + $0x44] ss:$8 sps:$4 sm:$0xff]   ;;  %v1260_v14 = vld [vmem:[#allocation5 + $0x40] ss:$8 sps:$4 sm:$0xff]  }
  0x36   :  { %v1258_v13 = vld [vmem:[#allocation5 + $0x144] ss:$8 sps:$4 sm:$0xff]   ;;  %v1261_v15 = vld [vmem:[#allocation5 + $0x140] ss:$8 sps:$4 sm:$0xff]   ;;  %v1262_v16 = vld [vmem:[#allocation5 + $0x34] ss:$8 sps:$4 sm:$0xff]  }
  0x37   :  { %577 = vmatpush1.bf16.msra.mxu0 %v1248_v6  ;;  %v1264_v17 = vld [vmem:[#allocation5 + $0x134] ss:$8 sps:$4 sm:$0xff]   ;;  %v1266_v18 = vld [vmem:[#allocation5 + $0x30] ss:$8 sps:$4 sm:$0xff]   ;;  %v1268_v20 = vld [vmem:[#allocation5 + $0x24] ss:$8 sps:$4 sm:$0xff]  }
  0x38   :  { %618 = vmatpush1.bf16.msra.mxu1 %v1249_v7  ;;  %578 = vmatprep.subr.bf16.mxu0 %v1250_v8  ;;  %v1267_v19 = vld [vmem:[#allocation5 + $0x130] ss:$8 sps:$4 sm:$0xff]   ;;  %v1270_v21 = vld [vmem:[#allocation5 + $0x124] ss:$8 sps:$4 sm:$0xff]   ;;  %v1272_v22 = vld [vmem:[#allocation5 + $0x20] ss:$8 sps:$4 sm:$0xff]  }
  0x39   :  { %619 = vmatprep.subr.bf16.mxu1 %v1252_v9  ;;  %v1273_v23 = vld [vmem:[#allocation5 + $0x120] ss:$8 sps:$4 sm:$0xff]   ;;  %v1274_v24 = vld [vmem:[#allocation5 + $0x14] ss:$8 sps:$4 sm:$0xff]   ;;  %v1278_v26 = vld [vmem:[#allocation5 + $0x10] ss:$8 sps:$4 sm:$0xff]  }
  0x3a   :  { %v1276_v25 = vld [vmem:[#allocation5 + $0x114] ss:$8 sps:$4 sm:$0xff]   ;;  %v1279_v27 = vld [vmem:[#allocation5 + $0x110] ss:$8 sps:$4 sm:$0xff]   ;;  %v1280_v28 = vld [vmem:[#allocation5 + $0x4] ss:$8 sps:$4 sm:$0xff]  }
  0x3b   :  { %579 = vmatpush1.bf16.msra.mxu0 %v1254_v10  ;;  %v1282_v29 = vld [vmem:[#allocation5 + $0x104] ss:$8 sps:$4 sm:$0xff]   ;;  %v1284_v30 = vld [vmem:[#allocation5] ss:$8 sps:$4 sm:$0xff]   ;;  %v1286_v32 = vld [vmem:[#allocation5 + $0xf4] ss:$8 sps:$4 sm:$0xff]  }
  0x3c   :  { %620 = vmatpush1.bf16.msra.mxu1 %v1255_v11  ;;  %580 = vmatprep.subr.bf16.mxu0 %v1256_v12  ;;  %v1285_v31 = vld [vmem:[#allocation5 + $0x100] ss:$8 sps:$4 sm:$0xff]   ;;  %v1288_v33 = vld [vmem:[#allocation5 + $0x1f4] ss:$8 sps:$4 sm:$0xff]   ;;  %v1290_v34 = vld [vmem:[#allocation5 + $0xf0] ss:$8 sps:$4 sm:$0xff]  }
  0x3d   :  { %621 = vmatprep.subr.bf16.mxu1 %v1258_v13  ;;  %v1291_v35 = vld [vmem:[#allocation5 + $0x1f0] ss:$8 sps:$4 sm:$0xff]   ;;  %v1546_v36 = vmov 1983009808   ;;  %v1292_v39 = vld [vmem:[#allocation5 + $0xe4] ss:$8 sps:$4 sm:$0xff]  }
  0x3e   :  { %v76_v37 = vunpack.c.l.s4 %v1546_v36  ;;  %v1294_v40 = vld [vmem:[#allocation5 + $0x1e4] ss:$8 sps:$4 sm:$0xff]   ;;  %v1296_v41 = vld [vmem:[#allocation5 + $0xe0] ss:$8 sps:$4 sm:$0xff]   ;;  %v1590_v43 = vshrl.u32 %v78_v38, 7  ;;  %s1547_s13 = smov [#allocation10]  }
  0x3f   :  { %581 = vmatpush1.bf16.msra.mxu0 %v1260_v14  ;;  %v1297_v44 = vld [vmem:[#allocation5 + $0x1e0] ss:$8 sps:$4 sm:$0xff]   ;;  %v1298_v45 = vld [vmem:[#allocation5 + $0xd4] ss:$8 sps:$4 sm:$0xff]   ;;  %v1302_v47 = vld [vmem:[#allocation5 + $0xd0] ss:$8 sps:$4 sm:$0xff]  }
  0x40   :  { %622 = vmatpush1.bf16.msra.mxu1 %v1261_v15  ;;  %582 = vmatprep.subr.bf16.mxu0 %v1262_v16  ;;  %v77_v42 = vunpack.c.0.s8 %v76_v37  ;;  %v1300_v46 = vld [vmem:[#allocation5 + $0x1d4] ss:$8 sps:$4 sm:$0xff]   ;;  %v1303_v48 = vld [vmem:[#allocation5 + $0x1d0] ss:$8 sps:$4 sm:$0xff]   ;;  %v1304_v50 = vld [vmem:[#allocation5 + $0xc4] ss:$8 sps:$4 sm:$0xff]  }
  0x41   :  { %623 = vmatprep.subr.bf16.mxu1 %v1264_v17  ;;  %v1306_v51 = vld [vmem:[#allocation5 + $0x1c4] ss:$8 sps:$4 sm:$0xff]   ;;  %v1308_v53 = vld [vmem:[#allocation5 + $0xc0] ss:$8 sps:$4 sm:$0xff]   ;;  %v1310_v57 = vld [vmem:[#allocation5 + $0xb4] ss:$8 sps:$4 sm:$0xff]  }
  0x42   :  { %v1593_v49 = vsub.s32 %v77_v42, %v1590_v43  ;;  %v99_v52 = vld [vmem:[#allocation8] sm:$0xff]  ;;  %v1312_v58 = vld [vmem:[#allocation5 + $0x1b4] ss:$8 sps:$4 sm:$0xff]   ;;  %v1314_v61 = vld [vmem:[#allocation5 + $0xb0] ss:$8 sps:$4 sm:$0xff]   ;;  %s1090_s14 = sshll.u32 %s1547_s13, 4  ;;  %s1091_s14 = int_to_ptr.vmem [resolvable:$true] %s1090_s14 }
  0x43   :  { %583 = vmatpush1.bf16.msra.mxu0 %v1266_v18  ;;  %v101_v55 = vcombine.high %v99_v52, %v99_v52  ;;  %v1309_v56 = vld [vmem:[#allocation5 + $0x1c0] ss:$8 sps:$4 sm:$0xff]   ;;  %v1315_v0 = vld [vmem:[#allocation5 + $0x1b0] ss:$8 sps:$4 sm:$0xff]   ;;  %v1316_v1 = vld [vmem:[#allocation5 + $0xa4] ss:$8 sps:$4 sm:$0xff]   ;;  %p1517_p7 = scmp.lt.s32.totalorder %s1091_s14, %s1091_s14 }
  0x44   :  { %624 = vmatpush1.bf16.msra.mxu1 %v1267_v19  ;;  %584 = vmatprep.subr.bf16.mxu0 %v1268_v20  ;;  %v108_v54 = vrot.slane %v99_v52, %v1593_v49  ;;  %v1318_v2 = vld [vmem:[#allocation5 + $0x1a4] ss:$8 sps:$4 sm:$0xff]   ;;  %v1320_v4 = vld [vmem:[#allocation5 + $0xa0] ss:$8 sps:$4 sm:$0xff]   ;;  %v1322_v6 = vld [vmem:[#allocation5 + $0x94] ss:$8 sps:$4 sm:$0xff]  }
  0x45   :  { %625 = vmatprep.subr.bf16.mxu1 %v1270_v21  ;;  %v115_v60 = vrot.slane %v101_v55, %v1593_v49  ;;  %v1321_v5 = vld [vmem:[#allocation5 + $0x1a0] ss:$8 sps:$4 sm:$0xff]   ;;  %v1324_v7 = vld [vmem:[#allocation5 + $0x194] ss:$8 sps:$4 sm:$0xff]   ;;  %v1326_v8 = vld [vmem:[#allocation5 + $0x90] ss:$8 sps:$4 sm:$0xff]  }
  0x46   :  { %v116_v59 = vcombine.high %v108_v54, %v108_v54  ;;  %v1327_v9 = vld [vmem:[#allocation5 + $0x190] ss:$8 sps:$4 sm:$0xff]   ;;  %v1328_v10 = vld [vmem:[#allocation5 + $0x84] ss:$8 sps:$4 sm:$0xff]   ;;  %v1332_v12 = vld [vmem:[#allocation5 + $0x80] ss:$8 sps:$4 sm:$0xff]   ;;  %v122_v16 = vpack.c.bf16 %v108_v54, %v108_v54 }
  0x47   :  { %585 = vmatpush1.bf16.msra.mxu0 %v1272_v22  ;;  %v117_v63 = vcombine.high %v115_v60, %v115_v60  ;;  %v1330_v11 = vld [vmem:[#allocation5 + $0x184] ss:$8 sps:$4 sm:$0xff]   ;;  %v1333_v13 = vld [vmem:[#allocation5 + $0x180] ss:$8 sps:$4 sm:$0xff]   ;;  %v1337_v14 = vld [vmem:[#allocation2 + $0x74] ss:$8 sps:$4 sm:$0xff]   ;;  %v124_v17 = vpack.c.bf16 %v115_v60, %v115_v60 }
  0x48   :  { %626 = vmatpush1.bf16.msra.mxu1 %v1273_v23  ;;  %586 = vmatprep.subr.bf16.mxu0 %v1274_v24  ;;  %v123_v62 = vpack.c.bf16 %v116_v59, %v116_v59  ;;  %v1340_v15 = vld [vmem:[#allocation2 + $0x174] ss:$8 sps:$4 sm:$0xff]   ;;  %v1335_v18 = vld [vmem:[#allocation2 + $0x70] ss:$8 sps:$4 sm:$0xff]   ;;  %v1343_v20 = vld [vmem:[#allocation2 + $0x64] ss:$8 sps:$4 sm:$0xff]  }
  0x49   :  { %627 = vmatprep.subr.bf16.mxu1 %v1276_v25  ;;  %v125_v3 = vpack.c.bf16 %v117_v63, %v117_v63  ;;  %v1338_v19 = vld [vmem:[#allocation2 + $0x170] ss:$8 sps:$4 sm:$0xff]   ;;  %v1346_v21 = vld [vmem:[#allocation2 + $0x164] ss:$8 sps:$4 sm:$0xff]   ;;  %v1341_v22 = vld [vmem:[#allocation2 + $0x60] ss:$8 sps:$4 sm:$0xff]  }
  0x4a   :  { %606 = vmatprep.mubr.bf16.mxu0 %v123_v62  ;;  %v1344_v23 = vld [vmem:[#allocation2 + $0x160] ss:$8 sps:$4 sm:$0xff]   ;;  %v1349_v24 = vld [vmem:[#allocation2 + $0x54] ss:$8 sps:$4 sm:$0xff]   ;;  %v1367_v36 = vld [vmem:[#allocation2 + $0x24] ss:$8 sps:$4 sm:$0xff]  }
  0x4b   :  { %587 = vmatpush1.bf16.msra.mxu0 %v1278_v26  ;;  %647 = vmatprep.mubr.bf16.mxu1 %v125_v3  ;;  %v1352_v25 = vld [vmem:[#allocation2 + $0x154] ss:$8 sps:$4 sm:$0xff]   ;;  %v1347_v26 = vld [vmem:[#allocation2 + $0x50] ss:$8 sps:$4 sm:$0xff]   ;;  %v1370_v37 = vld [vmem:[#allocation2 + $0x124] ss:$8 sps:$4 sm:$0xff]  }
  0x4c   :  { %628 = vmatpush1.bf16.msra.mxu1 %v1279_v27  ;;  %588 = vmatprep.subr.bf16.mxu0 %v1280_v28  ;;  %v1350_v27 = vld [vmem:[#allocation2 + $0x150] ss:$8 sps:$4 sm:$0xff]   ;;  %v1355_v28 = vld [vmem:[#allocation2 + $0x44] ss:$8 sps:$4 sm:$0xff]   ;;  %v1365_v38 = vld [vmem:[#allocation2 + $0x20] ss:$8 sps:$4 sm:$0xff]  }
  0x4d   :  { %629 = vmatprep.subr.bf16.mxu1 %v1282_v29  ;;  %v1358_v29 = vld [vmem:[#allocation2 + $0x144] ss:$8 sps:$4 sm:$0xff]   ;;  %v1377_v55 = vld [vmem:[#allocation2] ss:$8 sps:$4 sm:$0xff]   ;;  %v1388_v59 = vld [vmem:[#allocation2 + $0x1f4] ss:$8 sps:$4 sm:$0xff]  }
  0x4e   :  { %v72_v42 = vld [vmem:[#allocation7] sm:$0xff]  ;;  %v1386_v60 = vld [vmem:[#allocation2 + $0x1f0] ss:$8 sps:$4 sm:$0xff]  }
  0x4f   :  { %589 = vmatpush1.bf16.msra.mxu0 %v1284_v30  ;;  %v1353_v30 = vld [vmem:[#allocation2 + $0x40] ss:$8 sps:$4 sm:$0xff]   ;;  %v1382_v52 = vld [vmem:[#allocation2 + $0x104] ss:$8 sps:$4 sm:$0xff]   ;;  %v1395_v3 = vld [vmem:[#allocation2 + $0xd0] ss:$8 sps:$4 sm:$0xff]  }
  0x50   :  { %630 = vmatpush1.bf16.msra.mxu1 %v1285_v31  ;;  %590 = vmatprep.subr.bf16.mxu0 %v1286_v32  ;;  %v1356_v31 = vld [vmem:[#allocation2 + $0x140] ss:$8 sps:$4 sm:$0xff]   ;;  %v1361_v32 = vld [vmem:[#allocation2 + $0x34] ss:$8 sps:$4 sm:$0xff]   ;;  %v1394_v62 = vld [vmem:[#allocation2 + $0x1e4] ss:$8 sps:$4 sm:$0xff]  }
  0x51   :  { %631 = vmatprep.subr.bf16.mxu1 %v1288_v33  ;;  %v1364_v33 = vld [vmem:[#allocation2 + $0x134] ss:$8 sps:$4 sm:$0xff]   ;;  %v1389_v63 = vld [vmem:[#allocation2 + $0xe0] ss:$8 sps:$4 sm:$0xff]  }
  0x53   :  { %591 = vmatpush2.bf16.msra.mxu0 %v1290_v34  ;;  %v1359_v34 = vld [vmem:[#allocation2 + $0x30] ss:$8 sps:$4 sm:$0xff]  }
  0x54   :  { %632 = vmatpush2.bf16.msra.mxu1 %v1291_v35  ;;  %592 = vmatprep.subr.bf16.mxu0 %v1292_v39  ;;  %v1362_v35 = vld [vmem:[#allocation2 + $0x130] ss:$8 sps:$4 sm:$0xff]   ;;  %v1368_v39 = vld [vmem:[#allocation2 + $0x120] ss:$8 sps:$4 sm:$0xff]  }
  0x55   :  { %633 = vmatprep.subr.bf16.mxu1 %v1294_v40  ;;  %v1373_v40 = vld [vmem:[#allocation2 + $0x14] ss:$8 sps:$4 sm:$0xff]  }
  0x57   :  { %593 = vmatpush2.bf16.msra.mxu0 %v1296_v41  ;;  %v1376_v41 = vld [vmem:[#allocation2 + $0x114] ss:$8 sps:$4 sm:$0xff]  }
  0x58   :  { %634 = vmatpush2.bf16.msra.mxu1 %v1297_v44  ;;  %594 = vmatprep.subr.bf16.mxu0 %v1298_v45  ;;  %v1598_v44 = vrot.slane %v72_v42, %v1593_v49  ;;  %v74_v45 = vcombine.high %v72_v42, %v72_v42 }
  0x59   :  { %635 = vmatprep.subr.bf16.mxu1 %v1300_v46  ;;  %v1371_v46 = vld [vmem:[#allocation2 + $0x10] ss:$8 sps:$4 sm:$0xff]  }
  0x5b   :  { %595 = vmatpush2.bf16.msra.mxu0 %v1302_v47  ;;  %v1374_v47 = vld [vmem:[#allocation2 + $0x110] ss:$8 sps:$4 sm:$0xff]  }
  0x5c   :  { %636 = vmatpush2.bf16.msra.mxu1 %v1303_v48  ;;  %596 = vmatprep.subr.bf16.mxu0 %v1304_v50  ;;  %v89_v48 = vcombine.high %v1598_v44, %v1598_v44  ;;  %v1603_v50 = vrot.slane %v74_v45, %v1593_v49  ;;  %v1383_v49 = vld [vmem:[#allocation2 + $0xf0] ss:$8 sps:$4 sm:$0xff]  }
  0x5d   :  { %637 = vmatprep.subr.bf16.mxu1 %v1306_v51  ;;  %v1379_v51 = vld [vmem:[#allocation2 + $0x4] ss:$8 sps:$4 sm:$0xff]  }
  0x5e   :  { %v90_v54 = vcombine.high %v1603_v50, %v1603_v50 }
  0x5f   :  { %597 = vmatpush2.bf16.msra.mxu0 %v1308_v53  ;;  %v96_v53 = vpack.c.bf16 %v89_v48, %v89_v48 }
  0x60   :  { %638 = vmatpush2.bf16.msra.mxu1 %v1309_v56  ;;  %598 = vmatprep.subr.bf16.mxu0 %v1310_v57  ;;  %v1380_v56 = vld [vmem:[#allocation2 + $0x100] ss:$8 sps:$4 sm:$0xff]   ;;  %v98_v57 = vpack.c.bf16 %v90_v54, %v90_v54 }
  0x61   :  { %639 = vmatprep.subr.bf16.mxu1 %v1312_v58  ;;  %v1385_v58 = vld [vmem:[#allocation2 + $0xf4] ss:$8 sps:$4 sm:$0xff]  }
  0x63   :  { %599 = vmatpush2.bf16.msra.mxu0 %v1314_v61  ;;  %v1391_v61 = vld [vmem:[#allocation2 + $0xe4] ss:$8 sps:$4 sm:$0xff]  }
  0x64   :  { %640 = vmatpush2.bf16.msra.mxu1 %v1315_v0  ;;  %600 = vmatprep.subr.bf16.mxu0 %v1316_v1  ;;  %v1392_v0 = vld [vmem:[#allocation2 + $0x1e0] ss:$8 sps:$4 sm:$0xff]   ;;  %v1397_v1 = vld [vmem:[#allocation2 + $0xd4] ss:$8 sps:$4 sm:$0xff]  }
  0x65   :  { %641 = vmatprep.subr.bf16.mxu1 %v1318_v2  ;;  %v1400_v2 = vld [vmem:[#allocation2 + $0x1d4] ss:$8 sps:$4 sm:$0xff]  }
  0x67   :  { %601 = vmatpush2.bf16.msra.mxu0 %v1320_v4  ;;  %v1398_v4 = vld [vmem:[#allocation2 + $0x1d0] ss:$8 sps:$4 sm:$0xff]  }
  0x68   :  { %642 = vmatpush2.bf16.msra.mxu1 %v1321_v5  ;;  %602 = vmatprep.subr.bf16.mxu0 %v1322_v6  ;;  %v1403_v5 = vld [vmem:[#allocation2 + $0xc4] ss:$8 sps:$4 sm:$0xff]  }
  0x69   :  { %643 = vmatprep.subr.bf16.mxu1 %v1324_v7  ;;  %v1406_v6 = vld [vmem:[#allocation2 + $0x1c4] ss:$8 sps:$4 sm:$0xff]   ;;  %v1401_v7 = vld [vmem:[#allocation2 + $0xc0] ss:$8 sps:$4 sm:$0xff]  }
  0x6b   :  { %603 = vmatpush2.bf16.msra.mxu0 %v1326_v8  ;;  %v1404_v8 = vld [vmem:[#allocation2 + $0x1c0] ss:$8 sps:$4 sm:$0xff]  }
  0x6c   :  { %644 = vmatpush2.bf16.msra.mxu1 %v1327_v9  ;;  %604 = vmatprep.subr.bf16.mxu0 %v1328_v10  ;;  %v1409_v9 = vld [vmem:[#allocation2 + $0xb4] ss:$8 sps:$4 sm:$0xff]  }
  0x6d   :  { %645 = vmatprep.subr.bf16.mxu1 %v1330_v11  ;;  %v1412_v10 = vld [vmem:[#allocation2 + $0x1b4] ss:$8 sps:$4 sm:$0xff]   ;;  %v1407_v11 = vld [vmem:[#allocation2 + $0xb0] ss:$8 sps:$4 sm:$0xff]  }
  0x6f   :  { %605 = vmatpush2.bf16.msra.mxu0 %v1332_v12  ;;  %v1410_v12 = vld [vmem:[#allocation2 + $0x1b0] ss:$8 sps:$4 sm:$0xff]  }
  0x70   :  { %646 = vmatpush2.bf16.msra.mxu1 %v1333_v13  ;;  %976 = vmatprep.subr.bf16.mxu0 %v1337_v14  ;;  %v1415_v13 = vld [vmem:[#allocation2 + $0xa4] ss:$8 sps:$4 sm:$0xff]  }
  0x71   :  { %1017 = vmatprep.subr.bf16.mxu1 %v1340_v15  ;;  %v1418_v14 = vld [vmem:[#allocation2 + $0x1a4] ss:$8 sps:$4 sm:$0xff]   ;;  %v1413_v15 = vld [vmem:[#allocation2 + $0xa0] ss:$8 sps:$4 sm:$0xff]  }
  0x72   :  { %607 = vmatmul.mubr.bf16.vlgmr.msra.gmra.mxu0 %v122_v16  ;;  %v1416_v16 = vld [vmem:[#allocation2 + $0x1a0] ss:$8 sps:$4 sm:$0xff]  }
  0x73   :  { %648 = vmatmul.mubr.bf16.vlgmr.msra.gmra.mxu1 %v124_v17  ;;  %977 = vmatpush1.bf16.msra.mxu0 %v1335_v18  ;;  %v1421_v17 = vld [vmem:[#allocation2 + $0x94] ss:$8 sps:$4 sm:$0xff]  }
  0x74   :  { %1018 = vmatpush1.bf16.msra.mxu1 %v1338_v19  ;;  %978 = vmatprep.subr.bf16.mxu0 %v1343_v20  ;;  %v1424_v18 = vld [vmem:[#allocation2 + $0x194] ss:$8 sps:$4 sm:$0xff]   ;;  %v1419_v19 = vld [vmem:[#allocation2 + $0x90] ss:$8 sps:$4 sm:$0xff]  }
  0x75   :  { %1019 = vmatprep.subr.bf16.mxu1 %v1346_v21  ;;  %1008 = vmatprep.mubr.bf16.mxu0 %v96_v53  ;;  %v1422_v20 = vld [vmem:[#allocation2 + $0x190] ss:$8 sps:$4 sm:$0xff]   ;;  %v1427_v21 = vld [vmem:[#allocation2 + $0x84] ss:$8 sps:$4 sm:$0xff]  }
  0x76   :  { %1049 = vmatprep.mubr.bf16.mxu1 %v98_v57 }
  0x77   :  { %979 = vmatpush1.bf16.msra.mxu0 %v1341_v22  ;;  %v1430_v22 = vld [vmem:[#allocation2 + $0x184] ss:$8 sps:$4 sm:$0xff]  }
  0x78   :  { %1020 = vmatpush1.bf16.msra.mxu1 %v1344_v23  ;;  %980 = vmatprep.subr.bf16.mxu0 %v1349_v24  ;;  %v1425_v23 = vld [vmem:[#allocation2 + $0x80] ss:$8 sps:$4 sm:$0xff]  }
  0x79   :  { %1021 = vmatprep.subr.bf16.mxu1 %v1352_v25  ;;  %v1428_v24 = vld [vmem:[#allocation2 + $0x180] ss:$8 sps:$4 sm:$0xff]   ;;  %v95_v25 = vpack.c.bf16 %v1598_v44, %v1598_v44 }
  0x7b   :  { %981 = vmatpush1.bf16.msra.mxu0 %v1347_v26  ;;  %v97_v26 = vpack.c.bf16 %v1603_v50, %v1603_v50 }
  0x7c   :  { %1022 = vmatpush1.bf16.msra.mxu1 %v1350_v27  ;;  %982 = vmatprep.subr.bf16.mxu0 %v1355_v28 }
  0x7d   :  { %1023 = vmatprep.subr.bf16.mxu1 %v1358_v29 }
  0x7f   :  { %983 = vmatpush1.bf16.msra.mxu0 %v1353_v30 }
  0x80   :  { %1024 = vmatpush1.bf16.msra.mxu1 %v1356_v31  ;;  %984 = vmatprep.subr.bf16.mxu0 %v1361_v32 }
  0x81   :  { %1025 = vmatprep.subr.bf16.mxu1 %v1364_v33 }
  0x83   :  { %985 = vmatpush1.bf16.msra.mxu0 %v1359_v34 }
  0x84   :  { %1026 = vmatpush1.bf16.msra.mxu1 %v1362_v35  ;;  %986 = vmatprep.subr.bf16.mxu0 %v1367_v36  ;;  %v1062_v36 = vsub.s32 0, %v1590_v43 }
  0x85   :  { %1027 = vmatprep.subr.bf16.mxu1 %v1370_v37  ;;  %v1066_v37 = vsub.s32 1, %v1590_v43 }
  0x87   :  { %987 = vmatpush1.bf16.msra.mxu0 %v1365_v38 }
  0x88   :  { %1028 = vmatpush1.bf16.msra.mxu1 %v1368_v39  ;;  %988 = vmatprep.subr.bf16.mxu0 %v1373_v40  ;;  %v1058_v40 = vld [vmem:[%s1621_s2] sm:$0x3]  ;;  %s1512_s2 = scalar_lea.vmem %s1091_s14, 64 }
  0x89   :  { %1029 = vmatprep.subr.bf16.mxu1 %v1376_v41  ;;  %v1067_v50 = vrot.slane %v1058_v40, %v1066_v37  ;;  %p1513_p6 = scmp.ne.s32.totalorder %s1091_s14, %s1512_s2  ;;  %p1518_p8 = scmp.lt.s32.totalorder %s1512_s2, %s1512_s2 }
  0x8b   :  { %989 = vmatpush1.bf16.msra.mxu0 %v1371_v46  ;;  %p1519_p9 = por %p1518_p8, %p1517_p7 }
  0x8c   :  { %1030 = vmatpush1.bf16.msra.mxu1 %v1374_v47  ;;  %990 = vmatprep.subr.bf16.mxu0 %v1379_v51  ;;  %v1063_v47 = vrot.slane %v1058_v40, %v1062_v36 }
  0x8d   :  { %1031 = vmatprep.subr.bf16.mxu1 %v1382_v52  ;;  %p1520_p10 = pnand %p1519_p9, %p1513_p6 }
  0x8f   :  { %991 = vmatpush1.bf16.msra.mxu0 %v1377_v55 }
  0x90   :  { %1032 = vmatpush1.bf16.msra.mxu1 %v1380_v56  ;;  %992 = vmatprep.subr.bf16.mxu0 %v1385_v58 }
  0x91   :  { %1033 = vmatprep.subr.bf16.mxu1 %v1388_v59 }
  0x93   :  { %993 = vmatpush2.bf16.msra.mxu0 %v1383_v49 }
  0x94   :  { %1034 = vmatpush2.bf16.msra.mxu1 %v1386_v60  ;;  %994 = vmatprep.subr.bf16.mxu0 %v1391_v61 }
  0x95   :  { %1035 = vmatprep.subr.bf16.mxu1 %v1394_v62 }
  0x97   :  { %995 = vmatpush2.bf16.msra.mxu0 %v1389_v63 }
  0x98   :  { %1036 = vmatpush2.bf16.msra.mxu1 %v1392_v0  ;;  %996 = vmatprep.subr.bf16.mxu0 %v1397_v1 }
  0x99   :  { %1037 = vmatprep.subr.bf16.mxu1 %v1400_v2 }
  0x9b   :  { %997 = vmatpush2.bf16.msra.mxu0 %v1395_v3 }
  0x9c   :  { %1038 = vmatpush2.bf16.msra.mxu1 %v1398_v4  ;;  %998 = vmatprep.subr.bf16.mxu0 %v1403_v5 }
  0x9d   :  { %1039 = vmatprep.subr.bf16.mxu1 %v1406_v6 }
  0x9f   :  { %999 = vmatpush2.bf16.msra.mxu0 %v1401_v7 }
  0xa0   :  { %1040 = vmatpush2.bf16.msra.mxu1 %v1404_v8  ;;  %1000 = vmatprep.subr.bf16.mxu0 %v1409_v9 }
  0xa1   :  { %1041 = vmatprep.subr.bf16.mxu1 %v1412_v10 }
  0xa3   :  { %1001 = vmatpush2.bf16.msra.mxu0 %v1407_v11 }
  0xa4   :  { %1042 = vmatpush2.bf16.msra.mxu1 %v1410_v12  ;;  %1002 = vmatprep.subr.bf16.mxu0 %v1415_v13 }
  0xa5   :  { %1043 = vmatprep.subr.bf16.mxu1 %v1418_v14 }
  0xa7   :  { %1003 = vmatpush2.bf16.msra.mxu0 %v1413_v15 }
  0xa8   :  { %1044 = vmatpush2.bf16.msra.mxu1 %v1416_v16  ;;  %1004 = vmatprep.subr.bf16.mxu0 %v1421_v17 }
  0xa9   :  { %1045 = vmatprep.subr.bf16.mxu1 %v1424_v18 }
  0xab   :  { %1005 = vmatpush2.bf16.msra.mxu0 %v1419_v19 }
  0xac   :  { %1046 = vmatpush2.bf16.msra.mxu1 %v1422_v20  ;;  %1006 = vmatprep.subr.bf16.mxu0 %v1427_v21 }
  0xad   :  { %1047 = vmatprep.subr.bf16.mxu1 %v1430_v22 }
  0xaf   :  { %1007 = vmatpush2.bf16.msra.mxu0 %v1425_v23 }
  0xb0   :  { %1048 = vmatpush2.bf16.msra.mxu1 %v1428_v24 }
  0xb2   :  { %1009 = vmatmul.mubr.bf16.vlgmr.msra.gmra.mxu0 %v95_v25 }
  0xb3   :  { %1050 = vmatmul.mubr.bf16.vlgmr.msra.gmra.mxu1 %v97_v26 }
 0x132   :  { %v608_v27 = vpop.f32.mrf.mxu0 }
 0x133   :  { %v649_v28 = vpop.f32.mrf.mxu1 }
 0x134   :  { %v650_v29 = vadd.f32 %v649_v28, %v608_v27  ;;  %v610_v30 = vpop.f32.mrf.mxu0 }
 0x135   :  { %v651_v31 = vpop.f32.mrf.mxu1 }
 0x136   :  { %v612_v32 = vpop.f32.mrf.mxu0  ;;  %v652_v41 = vadd.f32 %v651_v31, %v610_v30 }
 0x137   :  { %v653_v33 = vpop.f32.mrf.mxu1 }
 0x138   :  { %v613_v34 = vpop.f32.mrf.mxu0 }
 0x139   :  { %v654_v35 = vpop.f32.mrf.mxu1 }
 0x172   :  { %v1010_v38 = vpop.f32.mrf.mxu0 }
 0x173   :  { %v1051_v39 = vpop.f32.mrf.mxu1  ;;  %v1011_v42 = vadd.f32 %v1010_v38, %v650_v29 }
 0x174   :  { %v1012_v44 = vpop.f32.mrf.mxu0 }
 0x175   :  { %v1053_v45 = vpop.f32.mrf.mxu1  ;;  %v1052_v46 = vadd.f32 %v1051_v39, %v1011_v42  ;;  %v1013_v48 = vadd.f32 %v1012_v44, %v652_v41 }
 0x176   :  { %v1014_v51 = vpop.f32.mrf.mxu0 }
 0x177   :  { %v1055_v52 = vpop.f32.mrf.mxu1  ;;  %v1054_v53 = vadd.f32 %v1053_v45, %v1013_v48  ;;  %v1070_v43 = vadd.f32 %v1063_v47, %v1052_v46 }
 0x178   :  { %v1015_v54 = vpop.f32.mrf.mxu0 }
 0x179   :  { %v1056_v55 = vpop.f32.mrf.mxu1  ;;  %v1071_v56 = vadd.f32 %v1067_v50, %v1054_v53 }
 0x17b   :  { %v1074_v57 = vcombine.low %v1070_v43, %v1071_v56 }
 0x17d   :  { %1229 = vst.sshfl [vmem:[#allocation10] sm:$0x33 pattern:$0x76325410] %v1074_v57 }
 0x17e   :  { %1523 = shalt.err (!%p1520_p10)
}
 0x17f   :  { %1093 = dma.vmem_to_hbm [thread:$0]  %s1091_s14, 64, %s1624_s5, [#allocation4]  }
 0x180   :  { %1538 = dma.done.wait [#allocation4], 64  }
 0x181   :  { %1539 = vsyncadd [#allocation4], 4294967232 }
 0x182   :  { %1097 = vsyncpa [#allocation3], 1 }
 0x183   :  { %1098 = vsyncpa [#allocation6], 1 }
 0x184   :  { %1099 = vsyncpa [#allocation9], 1 }
 0x185   :  { %1100 = vsyncpa [#allocation4], 1 }

</bundles_post_ra>
